<compile_context>
chip_gen: v7x
topology: tpu7x:2x2x1
jax: 0.10.0
libtpu: 0.0.40
codegen_flags: <defaults>
</compile_context>

<pallas_src>
import numpy as np
import jax
import jax.numpy as jnp
from jax.experimental import pallas as pl
from jax.experimental.pallas import tpu as pltpu


_TILE_VMEM_BUDGET = 40 * 1024 * 1024   # budget for the pipelined tiles
_VMEM_LIMIT_BYTES = 48 * 1024 * 1024   # explicit scoped-VMEM limit (< 64 MiB v7x)


# ----------------------------------------------------------------------------
# Beta schedule (plain numpy, float64 — mirrors make_beta_schedule exactly)
# ----------------------------------------------------------------------------
def make_beta_schedule(schedule, n_timestep, beta_0=1e-4, beta_T=0.02, cosine_s=0.008):
    if schedule == 'quad':
        betas = np.linspace(beta_0 ** 0.5, beta_T ** 0.5, n_timestep, dtype=np.float64) ** 2
    elif schedule == 'linear':
        betas = np.linspace(beta_0, beta_T, n_timestep, dtype=np.float64)
    elif schedule == 'const':
        betas = beta_T * np.ones(n_timestep, dtype=np.float64)
    elif schedule == 'jsd':
        betas = 1.0 / np.linspace(n_timestep, 1, n_timestep, dtype=np.float64)
    elif schedule == 'cosine':
        timesteps = np.arange(n_timestep + 1, dtype=np.float64) / n_timestep + cosine_s
        alphas = timesteps / (1 + cosine_s) * np.pi / 2
        alphas = np.cos(alphas) ** 2
        alphas = alphas / alphas[0]
        betas = 1.0 - alphas[1:] / alphas[:-1]
        betas = np.minimum(betas, 0.999)
    else:
        raise NotImplementedError(schedule)
    return betas


# ----------------------------------------------------------------------------
# Fused Pallas kernel: ALL DDIM sampling steps for one pixel block.
# Grid = (num_pixel_blocks, ddim_steps); step axis last ("arbitrary"); the
# output block (same index across the step axis) is the resident x_t state.
# ----------------------------------------------------------------------------
def ddim_fused_kernel(params_ref,   # SMEM (S*5,) f32: per step [sr, srm1, sa, cf/srm1, 0.01*t]
                      w_ref,        # VMEM (Cx, Kin) f32: block-diag model weight (out x in)
                      b_ref,        # VMEM (Cx, 1)   f32: model bias column
                      condit_ref,   # VMEM (Cc_pk, tn)
                      xT_ref,       # VMEM (Cx,   tn)
                      noise_ref,    # VMEM (1, Cx, tn)  sigma-scaled noise for this step
                      out_ref):     # VMEM (Cx, tn)  resident x_t / final output
    Cin_c = condit_ref.shape[0]
    Cx = out_ref.shape[0]
    step = pl.program_id(1)

    # Initialize the resident state from x_T on the first step of this block.
    @pl.when(step == 0)
    def _():
        out_ref[...] = xT_ref[...]

    base = step * 5
    sr = params_ref[base + 0]        # sqrt_recip_alphas_bar[t]
    srm1 = params_ref[base + 1]      # sqrt_recipm1_alphas_bar[t]
    sa = params_ref[base + 2]        # sqrt_alpha_i_min_1[i]
    cf_srm1 = params_ref[base + 3]   # coeff[i] / sqrt_recipm1_alphas_bar[t]
    tb = params_ref[base + 4]        # 0.01 * t  (time conditioning of the toy model)

    x = out_ref[...]                 # (Cx,   tn)
    c = condit_ref[...]              # (Cin_c, tn)

    # Synthetic noise-prediction model as broadcast outer-product FMAs:
    #   pred = tanh( sum_j W[:, j] * input_row_j  +  b + 0.01*t )
    acc = w_ref[:, 0:1] * c[0:1, :]
    for j in range(1, Cin_c):
        acc = acc + w_ref[:, j:j + 1] * c[j:j + 1, :]
    for j in range(Cx):
        col = Cin_c + j
        acc = acc + w_ref[:, col:col + 1] * x[j:j + 1, :]
    pred_noise = jnp.tanh(acc + (b_ref[...] + tb))

    # DDIM update (clip=True branch of ddim_p_sample), divide folded on host.
    srx = sr * x
    x0 = jnp.clip(srx - srm1 * pred_noise, -1.0, 1.0)
    mean = sa * x0 + cf_srm1 * (srx - x0)

    # noise is pre-scaled by sigma[i] on the host and is exactly zero on the
    # final step, where sa == 1 and cf == 0, so mean == x0 (already clipped):
    # this last write IS the final clamped output.
    out_ref[...] = mean + noise_ref[0]


# ----------------------------------------------------------------------------
# Tiling helpers
# ----------------------------------------------------------------------------
def _num_tensorcores():
    try:
        dev = jax.devices()[0]
        if dev.platform != "tpu":
            return 1
        for attr in ("num_cores", "num_tensorcores", "core_count"):
            v = getattr(dev, attr, None)
            if isinstance(v, int) and 1 <= v <= 8:
                return v
    except Exception:
        pass
    return 1


def _pick_tile_n(Np, row_bytes, num_cores, vmem_budget=_TILE_VMEM_BUDGET):
    """Lane-axis tile size: largest 128-multiple dividing Np within the VMEM
    budget, with at least `num_cores` blocks when cheaply possible."""
    if Np % 128 != 0:
        return Np                                   # single full-extent block
    max_tn = max(128, min(Np, (vmem_budget // max(row_bytes, 1)) // 128 * 128))
    if num_cores > 1 and Np % (128 * num_cores) == 0:
        max_tn = min(max_tn, Np // num_cores)       # feed every TensorCore
    t = (max_tn // 128) * 128
    while t >= 128:
        if Np % t == 0:
            return t
        t -= 128
    return Np


def _build_ddim_call(S, Np, Cx, Ccp, tn):
    assert Np % tn == 0
    grid = (Np // tn, S)                            # step axis LAST ("arbitrary")
    Kin = Ccp + Cx
    smem_spec = pl.BlockSpec(memory_space=pltpu.MemorySpace.SMEM)
    call = pl.pallas_call(
        ddim_fused_kernel,
        out_shape=jax.ShapeDtypeStruct((Cx, Np), jnp.float32),
        grid=grid,
        in_specs=[
            smem_spec,                                          # params table
            pl.BlockSpec((Cx, Kin), lambda i, j: (0, 0)),       # model weight
            pl.BlockSpec((Cx, 1), lambda i, j: (0, 0)),         # model bias column
            pl.BlockSpec((Ccp, tn), lambda i, j: (0, i)),       # condit (once / block)
            pl.BlockSpec((Cx, tn), lambda i, j: (0, i)),        # x_T    (once / block)
            pl.BlockSpec((1, Cx, tn), lambda i, j: (j, 0, i)),  # per-step scaled noise
        ],
        out_specs=pl.BlockSpec((Cx, tn), lambda i, j: (0, i)),  # resident across steps
        compiler_params=pltpu.CompilerParams(
            dimension_semantics=("parallel", "arbitrary"),
            vmem_limit_bytes=_VMEM_LIMIT_BYTES),
    )
    return jax.jit(call)


# ----------------------------------------------------------------------------
# DDIM sampler (host-side glue mirroring DDIM_Sampler.__init__ / forward)
# ----------------------------------------------------------------------------
class DDIMSamplerPallas:
    def __init__(self, model_params, beta_1, beta_T, beta_scdl, T,
                 ddim_sampling_steps=10, eta=1.0):
        self.ddim_steps = ddim_sampling_steps
        self.eta = eta
        Wc, Wx, b = model_params
        self.Wc = np.asarray(Wc, dtype=np.float32)              # (Cc, C)
        self.Wx = np.asarray(Wx, dtype=np.float32)              # (C,  C)
        self.b = np.asarray(b, dtype=np.float32).reshape(-1)    # (C,)

        betas = make_beta_schedule(beta_scdl, T, beta_1, beta_T)  # float64
        alphas = 1.0 - betas
        alphas_bar = np.cumprod(alphas, axis=0)
        self.alphas_bar = alphas_bar

        # torch.linspace(-1, T-1, steps=ddim_steps+1, dtype=long)[1:]
        tau = np.linspace(-1, T - 1, num=self.ddim_steps + 1).astype(np.int64)[1:]
        self.tau = tau

        alpha_tau_i = alphas_bar[tau]
        alpha_tau_i_min_1 = np.concatenate(
            [np.array([1.0], dtype=np.float64), alphas_bar[tau[:-1]]])

        self.sigma = eta * np.sqrt(
            (1 - alpha_tau_i_min_1) / (1 - alpha_tau_i)
            * (1 - alpha_tau_i / alpha_tau_i_min_1))
        self.coeff = np.sqrt(1 - alpha_tau_i_min_1 - self.sigma ** 2)
        self.sqrt_alpha_i_min_1 = np.sqrt(alpha_tau_i_min_1)
        self.sqrt_recip_alphas_bar = np.sqrt(1.0 / alphas_bar)
        self.sqrt_recipm1_alphas_bar = np.sqrt(1.0 / alphas_bar - 1.0)
        assert self.coeff[0] == 0.0 and self.sqrt_alpha_i_min_1[0] == 1.0, \
            'DDIM parameter error'

        # Per-grid-step scalar table.  Grid step j executes original index
        # i = ddim_steps - 1 - j (the reversed() loop of the reference).
        S = self.ddim_steps
        params = np.zeros((S, 5), dtype=np.float64)
        sigma_rev = np.zeros((S,), dtype=np.float64)
        for j, i in enumerate(reversed(range(S))):
            t = int(self.tau[i])
            params[j] = [self.sqrt_recip_alphas_bar[t],
                         self.sqrt_recipm1_alphas_bar[t],
                         self.sqrt_alpha_i_min_1[i],
                         self.coeff[i] / self.sqrt_recipm1_alphas_bar[t],
                         0.01 * t]
            sigma_rev[j] = self.sigma[i]
        sigma_rev[S - 1] = 0.0   # reference uses noise = 0 when i == 0
        self._params_flat = jnp.asarray(params.reshape(-1), dtype=jnp.float32)
        self._sigma_rev = jnp.asarray(sigma_rev.reshape(S, 1, 1), dtype=jnp.float32)

        self._fn_cache = {}      # pallas_call built & jitted once per shape
        self._wpk_cache = {}     # packed block-diagonal weights per pack factor

    # ---- helpers ------------------------------------------------------------
    @staticmethod
    def _pack_factor(C, N):
        """How many pixel groups to fold into the sublane axis (target 8 rows)."""
        if 0 < C < 8 and 8 % C == 0:
            P = 8 // C
            if N % P == 0:
                return P
        return 1

    def _get_packed_model(self, P):
        if P not in self._wpk_cache:
            C = self.Wx.shape[0]
            Cc = self.Wc.shape[0]
            Kin = P * Cc + P * C
            W = np.zeros((P * C, Kin), dtype=np.float32)
            for p in range(P):
                W[p * C:(p + 1) * C, p * Cc:(p + 1) * Cc] = self.Wc.T
                W[p * C:(p + 1) * C, P * Cc + p * C: P * Cc + (p + 1) * C] = self.Wx.T
            bcol = np.tile(self.b, P).reshape(P * C, 1).astype(np.float32)
            self._wpk_cache[P] = (jnp.asarray(W), jnp.asarray(bcol))
        return self._wpk_cache[P]

    def _make_noise(self, key, C, N, P):
        """Sigma-scaled Gaussian noise for every grid step, in packed layout."""
        Np = N // P
        z = jax.random.normal(key, (self.ddim_steps, P * C, Np), dtype=jnp.float32)
        return z * self._sigma_rev
        # TODO(synk): in-kernel pltpu.prng_* would avoid streaming this from HBM,
        # but it has no lowering on the CPU/interpret fallback path.

    def _get_fn(self, Np, Cx, Ccp, tn):
        key = (self.ddim_steps, Np, Cx, Ccp, tn)
        if key not in self._fn_cache:
            self._fn_cache[key] = _build_ddim_call(self.ddim_steps, Np, Cx, Ccp, tn)
        return self._fn_cache[key]

    # ---- forward ------------------------------------------------------------
    def forward(self, condit, x_T, key):
        """condit, x_T: NCHW float32 arrays with identical batch/spatial shape."""
        B, C, H, W = x_T.shape
        Cc = condit.shape[1]
        N = B * H * W

        P = self._pack_factor(C, N)
        Np = N // P
        Cx = P * C
        Ccp = P * Cc

        # approx VMEM bytes per lane column (condit + x_T + noise + out, 2x buffered)
        row_bytes = 8 * (Ccp + 3 * Cx)
        tn = _pick_tile_n(Np, row_bytes, _num_tensorcores())

        # NCHW -> (C, B*H*W) -> packed (P*C, N/P): pixels lane-dense, 8 sublanes.
        condit_f = jnp.transpose(condit, (1, 0, 2, 3)).reshape(Cc, N).astype(jnp.float32)
        xT_f = jnp.transpose(x_T, (1, 0, 2, 3)).reshape(C, N).astype(jnp.float32)
        condit_p = condit_f.reshape(Cc, P, Np).transpose(1, 0, 2).reshape(Ccp, Np)
        xT_p = xT_f.reshape(C, P, Np).transpose(1, 0, 2).reshape(Cx, Np)

        noise = self._make_noise(key, C, N, P)                  # (S, Cx, Np)
        W_pk, b_pk = self._get_packed_model(P)

        fn = self._get_fn(Np, Cx, Ccp, tn)
        out_p = fn(self._params_flat, W_pk, b_pk, condit_p, xT_p, noise)  # (Cx, Np)

        out_f = out_p.reshape(P, C, Np).transpose(1, 0, 2).reshape(C, N)
        return jnp.transpose(out_f.reshape(C, B, H, W), (1, 0, 2, 3))


# ----------------------------------------------------------------------------
# Pure-JAX reference (mirrors the torch module step-by-step, same noise stream)
# ----------------------------------------------------------------------------
def reference_forward(sampler, condit, x_T, noise_packed, P):
    B, C, H, W = x_T.shape
    Cc = condit.shape[1]
    N = B * H * W
    Np = N // P
    c_f = jnp.transpose(condit, (1, 0, 2, 3)).reshape(Cc, N).astype(jnp.float32)
    x = jnp.transpose(x_T, (1, 0, 2, 3)).reshape(C, N).astype(jnp.float32)
    Wc = jnp.asarray(sampler.Wc)
    Wx = jnp.asarray(sampler.Wx)
    b = jnp.asarray(sampler.b).reshape(C, 1)
    S = sampler.ddim_steps
    for j, i in enumerate(reversed(range(S))):
        t = int(sampler.tau[i])
        pred = jnp.tanh(Wc.T @ c_f + Wx.T @ x + b + 0.01 * t)
        sr = jnp.float32(sampler.sqrt_recip_alphas_bar[t])
        srm1 = jnp.float32(sampler.sqrt_recipm1_alphas_bar[t])
        x0 = jnp.clip(sr * x - srm1 * pred, -1.0, 1.0)
        pred = (sr * x - x0) / srm1
        mean = (jnp.float32(sampler.sqrt_alpha_i_min_1[i]) * x0
                + jnp.float32(sampler.coeff[i]) * pred)
        nz = noise_packed[j].reshape(P, C, Np).transpose(1, 0, 2).reshape(C, N)
        x = mean + nz                                 # nz already sigma-scaled
    x = jnp.clip(x, -1.0, 1.0)
    return jnp.transpose(x.reshape(C, B, H, W), (1, 0, 2, 3))


# ----------------------------------------------------------------------------
# Demo
# ----------------------------------------------------------------------------
if __name__ == "__main__":
    # TODO(synk): the original `self.model` is an arbitrary external U-Net; it is
    # replaced here by a deterministic synthetic 1x1-conv + tanh noise predictor.
    B, C, H, W = 2, 4, 16, 16        # x_t channels
    Cc = 4                           # condit channels (model input = Cc + C = 8)
    T = 100
    ddim_steps = 10

    key = jax.random.PRNGKey(0)
    k_c, k_x, k_wc, k_wx, k_noise = jax.random.split(key, 5)

    condit = jax.random.normal(k_c, (B, Cc, H, W), dtype=jnp.float32)
    x_T = jax.random.normal(k_x, (B, C, H, W), dtype=jnp.float32)

    # deterministic synthetic model weights
    Wc = 0.1 * jax.random.normal(k_wc, (Cc, C), dtype=jnp.float32)
    Wx = 0.1 * jax.random.normal(k_wx, (C, C), dtype=jnp.float32)
    b = jnp.zeros((C,), dtype=jnp.float32)

    sampler = DDIMSamplerPallas((Wc, Wx, b),
                                beta_1=1e-4, beta_T=0.02, beta_scdl='linear',
                                T=T, ddim_sampling_steps=ddim_steps, eta=1.0)

    x_0 = sampler.forward(condit, x_T, k_noise)
    x_0 = jax.block_until_ready(x_0)

    assert x_0.shape == (B, C, H, W)
    assert bool(jnp.all(jnp.isfinite(x_0)))
    assert bool(jnp.all(x_0 <= 1.0)) and bool(jnp.all(x_0 >= -1.0))

    # Correctness: compare against a pure-JAX step-by-step reference using the
    # exact same (deterministic) noise stream.
    P = DDIMSamplerPallas._pack_factor(C, B * H * W)
    noise_same = sampler._make_noise(k_noise, C, B * H * W, P)
    ref = jax.block_until_ready(reference_forward(sampler, condit, x_T, noise_same, P))
    max_err = float(jnp.max(jnp.abs(x_0 - ref)))
    assert max_err < 2e-3, f"mismatch vs reference: {max_err}"

    print("KERNEL_OK")
</pallas_src>

<mosaic_0001>
module attributes {stable_mosaic.version = 11 : i64} {
  func.func @ddim_fused_kernel(%arg0: i32, %arg1: i32, %arg2: memref<50xf32, #tpu.memory_space<smem>>, %arg3: memref<8x16xf32, #tpu.memory_space<vmem>>, %arg4: memref<8x1xf32, #tpu.memory_space<vmem>>, %arg5: memref<8x256xf32, #tpu.memory_space<vmem>>, %arg6: memref<8x256xf32, #tpu.memory_space<vmem>>, %arg7: memref<1x8x256xf32, #tpu.memory_space<vmem>>, %arg8: memref<8x256xf32, #tpu.memory_space<vmem>>) attributes {dimension_semantics = [#tpu.dimension_semantics<parallel>, #tpu.dimension_semantics<arbitrary>], iteration_bounds = array<i64: 1, 10>, scalar_prefetch = 0 : i64, scratch_operands = 0 : i64, tpu.core_type = #tpu.core_type<tc>, window_params = [{transform_indices = @transform_0, window_bounds = array<i64: 50>}, {pipeline_mode = #tpu.pipeline_mode<synchronous>, transform_indices = @transform_1, window_bounds = array<i64: 8, 16>}, {pipeline_mode = #tpu.pipeline_mode<synchronous>, transform_indices = @transform_2, window_bounds = array<i64: 8, 1>}, {transform_indices = @transform_3, window_bounds = array<i64: 8, 256>}, {transform_indices = @transform_4, window_bounds = array<i64: 8, 256>}, {transform_indices = @transform_5, window_bounds = array<i64: 1, 8, 256>}, {transform_indices = @transform_6, window_bounds = array<i64: 8, 256>}]} {
    %c0_i32 = arith.constant 0 : i32
    %0 = arith.cmpi eq, %arg1, %c0_i32 : i32
    %1 = arith.extui %0 : i1 to i32
    %c0_i32_0 = arith.constant 0 : i32
    %2 = arith.cmpi ne, %1, %c0_i32_0 : i32
    scf.if %2 {
      %c0_30 = arith.constant 0 : index
      %c0_31 = arith.constant 0 : index
      %141 = vector.load %arg6[%c0_30, %c0_31] : memref<8x256xf32, #tpu.memory_space<vmem>>, vector<8x256xf32>
      %c0_32 = arith.constant 0 : index
      %c0_33 = arith.constant 0 : index
      %142 = vector.load %arg8[%c0_32, %c0_33] : memref<8x256xf32, #tpu.memory_space<vmem>>, vector<8x256xf32>
      tpu.vector_store %arg8[%c0_32, %c0_33], %141 {strides = array<i32>} : memref<8x256xf32, #tpu.memory_space<vmem>>, vector<8x256xf32>,
    } else {
    }
    %c5_i32 = arith.constant 5 : i32
    %3 = arith.muli %arg1, %c5_i32 : i32
    %c0_i32_1 = arith.constant 0 : i32
    %4 = arith.addi %3, %c0_i32_1 : i32
    %5 = arith.index_cast %4 : i32 to index
    %6 = memref.load %arg2[%5] : memref<50xf32, #tpu.memory_space<smem>>
    %c1_i32 = arith.constant 1 : i32
    %7 = arith.addi %3, %c1_i32 : i32
    %8 = arith.index_cast %7 : i32 to index
    %9 = memref.load %arg2[%8] : memref<50xf32, #tpu.memory_space<smem>>
    %c2_i32 = arith.constant 2 : i32
    %10 = arith.addi %3, %c2_i32 : i32
    %11 = arith.index_cast %10 : i32 to index
    %12 = memref.load %arg2[%11] : memref<50xf32, #tpu.memory_space<smem>>
    %c3_i32 = arith.constant 3 : i32
    %13 = arith.addi %3, %c3_i32 : i32
    %14 = arith.index_cast %13 : i32 to index
    %15 = memref.load %arg2[%14] : memref<50xf32, #tpu.memory_space<smem>>
    %c4_i32 = arith.constant 4 : i32
    %16 = arith.addi %3, %c4_i32 : i32
    %17 = arith.index_cast %16 : i32 to index
    %18 = memref.load %arg2[%17] : memref<50xf32, #tpu.memory_space<smem>>
    %c0 = arith.constant 0 : index
    %c0_2 = arith.constant 0 : index
    %19 = vector.load %arg8[%c0, %c0_2] : memref<8x256xf32, #tpu.memory_space<vmem>>, vector<8x256xf32>
    %c0_3 = arith.constant 0 : index
    %c0_4 = arith.constant 0 : index
    %20 = vector.load %arg5[%c0_3, %c0_4] : memref<8x256xf32, #tpu.memory_space<vmem>>, vector<8x256xf32>
    %c0_5 = arith.constant 0 : index
    %c0_6 = arith.constant 0 : index
    %21 = vector.load %arg3[%c0_5, %c0_6] : memref<8x16xf32, #tpu.memory_space<vmem>>, vector<8x1xf32>
    %22 = vector.extract_strided_slice %20 {offsets = [0, 0], sizes = [1, 256], strides = [1, 1]} : vector<8x256xf32> to vector<1x256xf32>
    %23 = vector.broadcast %21 : vector<8x1xf32> to vector<8x256xf32>
    %24 = vector.broadcast %22 : vector<1x256xf32> to vector<8x256xf32>
    %25 = arith.mulf %23, %24 : vector<8x256xf32>
    %c0_7 = arith.constant 0 : index
    %c1 = arith.constant 1 : index
    %26 = vector.load %arg3[%c0_7, %c1] : memref<8x16xf32, #tpu.memory_space<vmem>>, vector<8x1xf32>
    %27 = vector.extract_strided_slice %20 {offsets = [1, 0], sizes = [1, 256], strides = [1, 1]} : vector<8x256xf32> to vector<1x256xf32>
    %28 = vector.broadcast %26 : vector<8x1xf32> to vector<8x256xf32>
    %29 = vector.broadcast %27 : vector<1x256xf32> to vector<8x256xf32>
    %30 = arith.mulf %28, %29 : vector<8x256xf32>
    %31 = arith.addf %25, %30 : vector<8x256xf32>
    %c0_8 = arith.constant 0 : index
    %c2 = arith.constant 2 : index
    %32 = vector.load %arg3[%c0_8, %c2] : memref<8x16xf32, #tpu.memory_space<vmem>>, vector<8x1xf32>
    %33 = vector.extract_strided_slice %20 {offsets = [2, 0], sizes = [1, 256], strides = [1, 1]} : vector<8x256xf32> to vector<1x256xf32>
    %34 = vector.broadcast %32 : vector<8x1xf32> to vector<8x256xf32>
    %35 = vector.broadcast %33 : vector<1x256xf32> to vector<8x256xf32>
    %36 = arith.mulf %34, %35 : vector<8x256xf32>
    %37 = arith.addf %31, %36 : vector<8x256xf32>
    %c0_9 = arith.constant 0 : index
    %c3 = arith.constant 3 : index
    %38 = vector.load %arg3[%c0_9, %c3] : memref<8x16xf32, #tpu.memory_space<vmem>>, vector<8x1xf32>
    %39 = vector.extract_strided_slice %20 {offsets = [3, 0], sizes = [1, 256], strides = [1, 1]} : vector<8x256xf32> to vector<1x256xf32>
    %40 = vector.broadcast %38 : vector<8x1xf32> to vector<8x256xf32>
    %41 = vector.broadcast %39 : vector<1x256xf32> to vector<8x256xf32>
    %42 = arith.mulf %40, %41 : vector<8x256xf32>
    %43 = arith.addf %37, %42 : vector<8x256xf32>
    %c0_10 = arith.constant 0 : index
    %c4 = arith.constant 4 : index
    %44 = vector.load %arg3[%c0_10, %c4] : memref<8x16xf32, #tpu.memory_space<vmem>>, vector<8x1xf32>
    %45 = vector.extract_strided_slice %20 {offsets = [4, 0], sizes = [1, 256], strides = [1, 1]} : vector<8x256xf32> to vector<1x256xf32>
    %46 = vector.broadcast %44 : vector<8x1xf32> to vector<8x256xf32>
    %47 = vector.broadcast %45 : vector<1x256xf32> to vector<8x256xf32>
    %48 = arith.mulf %46, %47 : vector<8x256xf32>
    %49 = arith.addf %43, %48 : vector<8x256xf32>
    %c0_11 = arith.constant 0 : index
    %c5 = arith.constant 5 : index
    %50 = vector.load %arg3[%c0_11, %c5] : memref<8x16xf32, #tpu.memory_space<vmem>>, vector<8x1xf32>
    %51 = vector.extract_strided_slice %20 {offsets = [5, 0], sizes = [1, 256], strides = [1, 1]} : vector<8x256xf32> to vector<1x256xf32>
    %52 = vector.broadcast %50 : vector<8x1xf32> to vector<8x256xf32>
    %53 = vector.broadcast %51 : vector<1x256xf32> to vector<8x256xf32>
    %54 = arith.mulf %52, %53 : vector<8x256xf32>
    %55 = arith.addf %49, %54 : vector<8x256xf32>
    %c0_12 = arith.constant 0 : index
    %c6 = arith.constant 6 : index
    %56 = vector.load %arg3[%c0_12, %c6] : memref<8x16xf32, #tpu.memory_space<vmem>>, vector<8x1xf32>
    %57 = vector.extract_strided_slice %20 {offsets = [6, 0], sizes = [1, 256], strides = [1, 1]} : vector<8x256xf32> to vector<1x256xf32>
    %58 = vector.broadcast %56 : vector<8x1xf32> to vector<8x256xf32>
    %59 = vector.broadcast %57 : vector<1x256xf32> to vector<8x256xf32>
    %60 = arith.mulf %58, %59 : vector<8x256xf32>
    %61 = arith.addf %55, %60 : vector<8x256xf32>
    %c0_13 = arith.constant 0 : index
    %c7 = arith.constant 7 : index
    %62 = vector.load %arg3[%c0_13, %c7] : memref<8x16xf32, #tpu.memory_space<vmem>>, vector<8x1xf32>
    %63 = vector.extract_strided_slice %20 {offsets = [7, 0], sizes = [1, 256], strides = [1, 1]} : vector<8x256xf32> to vector<1x256xf32>
    %64 = vector.broadcast %62 : vector<8x1xf32> to vector<8x256xf32>
    %65 = vector.broadcast %63 : vector<1x256xf32> to vector<8x256xf32>
    %66 = arith.mulf %64, %65 : vector<8x256xf32>
    %67 = arith.addf %61, %66 : vector<8x256xf32>
    %c0_14 = arith.constant 0 : index
    %c8 = arith.constant 8 : index
    %68 = vector.load %arg3[%c0_14, %c8] : memref<8x16xf32, #tpu.memory_space<vmem>>, vector<8x1xf32>
    %69 = vector.extract_strided_slice %19 {offsets = [0, 0], sizes = [1, 256], strides = [1, 1]} : vector<8x256xf32> to vector<1x256xf32>
    %70 = vector.broadcast %68 : vector<8x1xf32> to vector<8x256xf32>
    %71 = vector.broadcast %69 : vector<1x256xf32> to vector<8x256xf32>
    %72 = arith.mulf %70, %71 : vector<8x256xf32>
    %73 = arith.addf %67, %72 : vector<8x256xf32>
    %c0_15 = arith.constant 0 : index
    %c9 = arith.constant 9 : index
    %74 = vector.load %arg3[%c0_15, %c9] : memref<8x16xf32, #tpu.memory_space<vmem>>, vector<8x1xf32>
    %75 = vector.extract_strided_slice %19 {offsets = [1, 0], sizes = [1, 256], strides = [1, 1]} : vector<8x256xf32> to vector<1x256xf32>
    %76 = vector.broadcast %74 : vector<8x1xf32> to vector<8x256xf32>
    %77 = vector.broadcast %75 : vector<1x256xf32> to vector<8x256xf32>
    %78 = arith.mulf %76, %77 : vector<8x256xf32>
    %79 = arith.addf %73, %78 : vector<8x256xf32>
    %c0_16 = arith.constant 0 : index
    %c10 = arith.constant 10 : index
    %80 = vector.load %arg3[%c0_16, %c10] : memref<8x16xf32, #tpu.memory_space<vmem>>, vector<8x1xf32>
    %81 = vector.extract_strided_slice %19 {offsets = [2, 0], sizes = [1, 256], strides = [1, 1]} : vector<8x256xf32> to vector<1x256xf32>
    %82 = vector.broadcast %80 : vector<8x1xf32> to vector<8x256xf32>
    %83 = vector.broadcast %81 : vector<1x256xf32> to vector<8x256xf32>
    %84 = arith.mulf %82, %83 : vector<8x256xf32>
    %85 = arith.addf %79, %84 : vector<8x256xf32>
    %c0_17 = arith.constant 0 : index
    %c11 = arith.constant 11 : index
    %86 = vector.load %arg3[%c0_17, %c11] : memref<8x16xf32, #tpu.memory_space<vmem>>, vector<8x1xf32>
    %87 = vector.extract_strided_slice %19 {offsets = [3, 0], sizes = [1, 256], strides = [1, 1]} : vector<8x256xf32> to vector<1x256xf32>
    %88 = vector.broadcast %86 : vector<8x1xf32> to vector<8x256xf32>
    %89 = vector.broadcast %87 : vector<1x256xf32> to vector<8x256xf32>
    %90 = arith.mulf %88, %89 : vector<8x256xf32>
    %91 = arith.addf %85, %90 : vector<8x256xf32>
    %c0_18 = arith.constant 0 : index
    %c12 = arith.constant 12 : index
    %92 = vector.load %arg3[%c0_18, %c12] : memref<8x16xf32, #tpu.memory_space<vmem>>, vector<8x1xf32>
    %93 = vector.extract_strided_slice %19 {offsets = [4, 0], sizes = [1, 256], strides = [1, 1]} : vector<8x256xf32> to vector<1x256xf32>
    %94 = vector.broadcast %92 : vector<8x1xf32> to vector<8x256xf32>
    %95 = vector.broadcast %93 : vector<1x256xf32> to vector<8x256xf32>
    %96 = arith.mulf %94, %95 : vector<8x256xf32>
    %97 = arith.addf %91, %96 : vector<8x256xf32>
    %c0_19 = arith.constant 0 : index
    %c13 = arith.constant 13 : index
    %98 = vector.load %arg3[%c0_19, %c13] : memref<8x16xf32, #tpu.memory_space<vmem>>, vector<8x1xf32>
    %99 = vector.extract_strided_slice %19 {offsets = [5, 0], sizes = [1, 256], strides = [1, 1]} : vector<8x256xf32> to vector<1x256xf32>
    %100 = vector.broadcast %98 : vector<8x1xf32> to vector<8x256xf32>
    %101 = vector.broadcast %99 : vector<1x256xf32> to vector<8x256xf32>
    %102 = arith.mulf %100, %101 : vector<8x256xf32>
    %103 = arith.addf %97, %102 : vector<8x256xf32>
    %c0_20 = arith.constant 0 : index
    %c14 = arith.constant 14 : index
    %104 = vector.load %arg3[%c0_20, %c14] : memref<8x16xf32, #tpu.memory_space<vmem>>, vector<8x1xf32>
    %105 = vector.extract_strided_slice %19 {offsets = [6, 0], sizes = [1, 256], strides = [1, 1]} : vector<8x256xf32> to vector<1x256xf32>
    %106 = vector.broadcast %104 : vector<8x1xf32> to vector<8x256xf32>
    %107 = vector.broadcast %105 : vector<1x256xf32> to vector<8x256xf32>
    %108 = arith.mulf %106, %107 : vector<8x256xf32>
    %109 = arith.addf %103, %108 : vector<8x256xf32>
    %c0_21 = arith.constant 0 : index
    %c15 = arith.constant 15 : index
    %110 = vector.load %arg3[%c0_21, %c15] : memref<8x16xf32, #tpu.memory_space<vmem>>, vector<8x1xf32>
    %111 = vector.extract_strided_slice %19 {offsets = [7, 0], sizes = [1, 256], strides = [1, 1]} : vector<8x256xf32> to vector<1x256xf32>
    %112 = vector.broadcast %110 : vector<8x1xf32> to vector<8x256xf32>
    %113 = vector.broadcast %111 : vector<1x256xf32> to vector<8x256xf32>
    %114 = arith.mulf %112, %113 : vector<8x256xf32>
    %115 = arith.addf %109, %114 : vector<8x256xf32>
    %c0_22 = arith.constant 0 : index
    %c0_23 = arith.constant 0 : index
    %116 = vector.load %arg4[%c0_22, %c0_23] : memref<8x1xf32, #tpu.memory_space<vmem>>, vector<8x1xf32>
    %117 = vector.broadcast %18 : f32 to vector<8x1xf32>
    %118 = arith.addf %116, %117 : vector<8x1xf32>
    %119 = vector.broadcast %118 : vector<8x1xf32> to vector<8x256xf32>
    %120 = arith.addf %115, %119 : vector<8x256xf32>
    %121 = math.tanh %120 : vector<8x256xf32>
    %122 = vector.broadcast %6 : f32 to vector<8x256xf32>
    %123 = arith.mulf %122, %19 : vector<8x256xf32>
    %124 = vector.broadcast %9 : f32 to vector<8x256xf32>
    %125 = arith.mulf %124, %121 : vector<8x256xf32>
    %126 = arith.subf %123, %125 : vector<8x256xf32>
    %cst = arith.constant -1.000000e+00 : f32
    %cst_24 = arith.constant 1.000000e+00 : f32
    %127 = vector.broadcast %cst : f32 to vector<8x256xf32>
    %128 = arith.maximumf %127, %126 : vector<8x256xf32>
    %129 = vector.broadcast %cst_24 : f32 to vector<8x256xf32>
    %130 = arith.minimumf %129, %128 : vector<8x256xf32>
    %131 = vector.broadcast %12 : f32 to vector<8x256xf32>
    %132 = arith.mulf %131, %130 : vector<8x256xf32>
    %133 = arith.subf %123, %130 : vector<8x256xf32>
    %134 = vector.broadcast %15 : f32 to vector<8x256xf32>
    %135 = arith.mulf %134, %133 : vector<8x256xf32>
    %136 = arith.addf %132, %135 : vector<8x256xf32>
    %c0_25 = arith.constant 0 : index
    %c0_26 = arith.constant 0 : index
    %c0_27 = arith.constant 0 : index
    %137 = vector.load %arg7[%c0_25, %c0_26, %c0_27] : memref<1x8x256xf32, #tpu.memory_space<vmem>>, vector<1x8x256xf32>
    %138 = vector.shape_cast %137 : vector<1x8x256xf32> to vector<8x256xf32>
    %139 = arith.addf %136, %138 : vector<8x256xf32>
    %c0_28 = arith.constant 0 : index
    %c0_29 = arith.constant 0 : index
    %140 = vector.load %arg8[%c0_28, %c0_29] : memref<8x256xf32, #tpu.memory_space<vmem>>, vector<8x256xf32>
    tpu.vector_store %arg8[%c0_28, %c0_29], %139 {strides = array<i32>} : memref<8x256xf32, #tpu.memory_space<vmem>>, vector<8x256xf32>,
    return
  }
  func.func @transform_0(%arg0: i32, %arg1: i32) -> i32 {
    %c0_i32 = arith.constant 0 : i32
    %c0_i32_0 = arith.constant 0 : i32
    return %c0_i32 : i32
  }
  func.func @transform_1(%arg0: i32, %arg1: i32) -> (i32, i32) {
    %c0_i32 = arith.constant 0 : i32
    %c0_i32_0 = arith.constant 0 : i32
    %c0_i32_1 = arith.constant 0 : i32
    return %c0_i32, %c0_i32_0 : i32, i32
  }
  func.func @transform_2(%arg0: i32, %arg1: i32) -> (i32, i32) {
    %c0_i32 = arith.constant 0 : i32
    %c0_i32_0 = arith.constant 0 : i32
    %c0_i32_1 = arith.constant 0 : i32
    return %c0_i32, %c0_i32_0 : i32, i32
  }
  func.func @transform_3(%arg0: i32, %arg1: i32) -> (i32, i32) {
    %c0_i32 = arith.constant 0 : i32
    %c0_i32_0 = arith.constant 0 : i32
    return %c0_i32, %arg0 : i32, i32
  }
  func.func @transform_4(%arg0: i32, %arg1: i32) -> (i32, i32) {
    %c0_i32 = arith.constant 0 : i32
    %c0_i32_0 = arith.constant 0 : i32
    return %c0_i32, %arg0 : i32, i32
  }
  func.func @transform_5(%arg0: i32, %arg1: i32) -> (i32, i32, i32) {
    %c0_i32 = arith.constant 0 : i32
    %c0_i32_0 = arith.constant 0 : i32
    return %arg1, %c0_i32, %arg0 : i32, i32, i32
  }
  func.func @transform_6(%arg0: i32, %arg1: i32) -> (i32, i32) {
    %c0_i32 = arith.constant 0 : i32
    %c0_i32_0 = arith.constant 0 : i32
    return %c0_i32, %arg0 : i32, i32
  }
}

</mosaic_0001>

<bundles_post_ra>
// kernel: tpu_custom_call.1
= control target key start
LH: loop header
LB: loop body
LE: loop exit
PB: predicated region body
PF: predicated region fallthrough
CT: control target
= control target key end

     0   :  { %11 = vsyncpa [#allocation5], 0  ;;  %s1534_s0 = inlined_call_operand.vmem [shape: f32[50], index: 0, kind: input, shape index: {}]   ;;  %s1535_s1 = inlined_call_operand.hbm [shape: f32[8,16], index: 1, kind: input, shape index: {}]   ;;  %s1536_s2 = inlined_call_operand.vmem [shape: f32[8,1], index: 2, kind: input, shape index: {}]   ;;  %s1537_s3 = inlined_call_operand.vmem [shape: f32[8,256], index: 3, kind: input, shape index: {}]   ;;  %s1538_s4 = inlined_call_operand.hbm [shape: f32[8,256], index: 4, kind: input, shape index: {}]   ;;  %s1539_s5 = inlined_call_operand.hbm [shape: f32[10,8,256], index: 5, kind: input, shape index: {}]   ;;  %s1540_s6 = inlined_call_operand.hbm [shape: f32[8,256], index: 6, kind: output, shape index: {}]  }
   0x1   :  { %12 = vsyncpa [#allocation3], 0 }
   0x2   :  { %13 = vsyncpa [#allocation8], 0 }
   0x3   :  { %14 = vsyncpa [#allocation4], 0  ;;  %s1192_s21 = smov 0   ;;  %s1194_s22 = smov 0  }
   0x4   :  { %s1196_s23 = smov 0   ;;  %s1198_s24 = smov 0  }
   0x5   :  { %s1200_s25 = smov 0   ;;  %s1202_s26 = smov 0  }
   0x6 LB: > { %s1221_s27 = sadd.s32 4294967295, %s1134_s26   ;;  %p169_p0 = scmp.ne.s32.totalorder %s1118_s22, %s1114_s21  ;;  %s1134_s26 = sphi %s1202_s26, %s20_s26   ;;  %s1130_s25 = sphi %s1200_s25, %s1561_s25   ;;  %s1126_s24 = sphi %s1198_s24, %s1560_s24   ;;  %s1122_s23 = sphi %s1196_s23, %s1559_s23   ;;  %s1118_s22 = sphi %s1194_s22, %s1558_s22   ;;  %s1114_s21 = sphi %s1192_s21, %s1557_s21  }
   0x7   : > { %p1541_p1 = scmp.eq.s32.totalorder %s1221_s27, 0  ;;  %p788_p2 = scmp.ge.s32.totalorder %s1134_s26, 1 }
   0x8   : > { %p206_p3 = scmp.lt.s32.totalorder %s1134_s26, 11  ;;  %s1136_s30 = smov [#allocation6]  }
   0x9   : > { %p1229_p4 = por %p1541_p1, %p169_p0  ;;  %s230_s7 = sshll.u32 %s1136_s30, 4  ;;  %s231_s7 = int_to_ptr.vmem [resolvable:$true] %s230_s7 }
   0xa   : > { %p1233_p5 = pnand %p788_p2, %p206_p3  ;;  %s219_s10 = sshll.u32 %s1534_s0, 4  ;;  %s1248_s10 = int_to_ptr.vmem [resolvable:$true] %s219_s10 }
   0xb   : > { %s1544_s28 = scalar_select %p1229_p4, 1, 0 }
   0xc   : > { %s1545_s29 = scalar_select %p1233_p5, 1, 0 }
   0xd   : > { %p828_p6 = pneg %p1233_p5  ;;  %s1137_s12 = smov [#allocation7]  }
   0xe   : > { %s1250_s13 = sshll.u32 %s1137_s12, 4  ;;  %s941_s16 = scalar_lea.hbm %s1535_s1, 128  ;;  %s257_s13 = int_to_ptr.vmem [resolvable:$true] %s1250_s13 }
   0xf   : > { %p1244_p7 = pnand %p828_p6, %p1541_p1  ;;  %p942_p8 = scmp.ne.s32.totalorder %s1535_s1, %s941_s16 }
  0x10   : > { %p948_p12 = scmp.lt.u32.totalorder %s941_s16, %s1535_s1 }
  0x11   : > { %p1260_p9 = pneg %p1244_p7 }
  0x13   : > { %p944_p10 = pnand %p1260_p9, %p942_p8 }
  0x15   : > { %p945_p11 = pneg %p944_p10 }
  0x17   : > { %p950_p13 = pnand %p948_p12, %p945_p11 }
  0x19   : > { %953 = shalt.err (!%p950_p13)
}
  0x1a   : > { %s954_s30 = scalar_lea.vmem %s231_s7, 128  ;;  %p962_p6 = scmp.lt.s32.totalorder %s231_s7, %s231_s7 }
  0x1b   : > { %p955_p0 = scmp.ne.s32.totalorder %s231_s7, %s954_s30  ;;  %p963_p1 = scmp.lt.s32.totalorder %s954_s30, %s954_s30 }
  0x1d   : > { %p957_p2 = pnand %p955_p0, %p1260_p9  ;;  %p964_p4 = por %p963_p1, %p962_p6 }
  0x1f   : > { %p958_p3 = pneg %p957_p2 }
  0x21   : > { %p965_p5 = pnand %p964_p4, %p958_p3 }
  0x23   : > { %968 = shalt.err (!%p965_p5)
}
  0x24   : > { %834 = dma.hbm_to_vmem [thread:$0]  (!%p1244_p7), %s1535_s1, 128, %s231_s7, [#allocation3]  }
  0x25   : > { %s969_s12 = scalar_lea.vmem %s1248_s10, 16  ;;  %p977_p12 = scmp.lt.s32.totalorder %s1248_s10, %s1248_s10 }
  0x26   : > { %p970_p8 = scmp.ne.s32.totalorder %s1248_s10, %s969_s12  ;;  %p978_p1 = scmp.lt.s32.totalorder %s969_s12, %s969_s12 }
  0x28   : > { %p972_p10 = pnand %p970_p8, %p1260_p9  ;;  %p979_p4 = por %p978_p1, %p977_p12 }
  0x2a   : > { %p973_p11 = pneg %p972_p10 }
  0x2c   : > { %p980_p5 = pnand %p979_p4, %p973_p11 }
  0x2e   : > { %983 = shalt.err (!%p980_p5)
}
  0x2f   : > { %s1138_s14 = smov [#allocation2]   ;;  %s984_s16 = scalar_lea.hbm %s1538_s4, 256 }
  0x30   : > { %831 = dma.vmem_to_smem (!%p1244_p7), %s1248_s10, 16, %s1138_s14, [#allocation5]  }
  0x31   : > { %p985_p13 = scmp.ne.s32.totalorder %s1538_s4, %s984_s16  ;;  %p991_p3 = scmp.lt.u32.totalorder %s984_s16, %s1538_s4 }
  0x33   : > { %p987_p0 = pnand %p985_p13, %p1260_p9 }
  0x35   : > { %p988_p2 = pneg %p987_p0 }
  0x37   : > { %p993_p6 = pnand %p991_p3, %p988_p2 }
  0x39   : > { %996 = shalt.err (!%p993_p6)
}
  0x3a   : > { %s997_s30 = scalar_lea.vmem %s257_s13, 256  ;;  %p1005_p12 = scmp.lt.s32.totalorder %s257_s13, %s257_s13 }
  0x3b   : > { %p998_p8 = scmp.ne.s32.totalorder %s257_s13, %s997_s30  ;;  %p1006_p1 = scmp.lt.s32.totalorder %s997_s30, %s997_s30 }
  0x3d   : > { %p1000_p10 = pnand %p998_p8, %p1260_p9  ;;  %p1007_p4 = por %p1006_p1, %p1005_p12 }
  0x3f   : > { %p1001_p11 = pneg %p1000_p10 }
  0x41   : > { %p1008_p5 = pnand %p1007_p4, %p1001_p11 }
  0x43   : > { %1011 = shalt.err (!%p1008_p5)
}
  0x44   : > { %837 = dma.hbm_to_vmem [thread:$0]  (!%p1244_p7), %s1538_s4, 256, %s257_s13, [#allocation8]  }
  0x45   : > { %s156_s19 = sadd.s32 1, %s1122_s23  ;;  %s29_s9 = sadd.s32 1, %s1130_s25 }
  0x46   : > { %p163_p9 = scmp.ne.s32.totalorder %s1122_s23, %s1118_s22  ;;  %p30_p13 = scmp.ge.s32.totalorder %s29_s9, 10 }
  0x47   : > { %p164_p0 = scmp.eq.s32.totalorder %s1134_s26, 0  ;;  %p845_p2 = scmp.lt.s32.totalorder %s1134_s26, 10 }
  0x48   : > { %s267_s11 = sand.u32 1, %s1134_s26   ;;  %s1563_s9 = smov (%p30_p13, %s29_s9), 0 }
  0x49   : > { %p165_p3 = por %p164_p0, %p163_p9  ;;  %s151_s12 = ssub.s32 %s1130_s25, %s1563_s9 }
  0x4a   : > { %s269_s14 = sand.u32 1, %s1122_s23   ;;  %p154_p6 = scmp.eq.s32.totalorder %s151_s12, 0 }
  0x4b   : > { %s794_s7 = sshll.u32 %s269_s14, 4  ;;  %s809_s15 = sshll.u32 %s1130_s25, 8 }
  0x4c   : > { %s1318_s16 = scalar_select %p154_p6, %s1122_s23, %s156_s19  }
  0x4d   : > { %s1323_s18 = scalar_lea.hbm %s1539_s5, %s809_s15  ;;  %s271_s20 = scalar_lea.vmem [#allocation9], %s794_s7 }
  0x4e   : > { %s281_s21 = sshll.u32 %s271_s20, 4  ;;  %p1329_p7 = pnand %p845_p2, %p165_p3  ;;  %s1325_s21 = int_to_ptr.vmem [resolvable:$true] %s281_s21 }
  0x4f   : > { %s268_s10 = scalar_lea.sflag [#allocation3], %s267_s11  ;;  %s1012_s8 = scalar_lea.hbm %s1323_s18, 256 }
  0x50   : > { %p1013_p8 = scmp.ne.s32.totalorder %s1323_s18, %s1012_s8  ;;  %p1014_p10 = pneg %p1329_p7 }
  0x51   : > { %s1017_s14 = scalar_lea.hbm %s1539_s5, 2560  ;;  %p1018_p1 = scmp.lt.u32.totalorder %s1323_s18, %s1539_s5 }
  0x52   : > { %p1015_p11 = pnand %p1014_p10, %p1013_p8  ;;  %p1019_p4 = scmp.lt.u32.totalorder %s1017_s14, %s1012_s8 }
  0x53   : > { %p1021_p9 = scmp.lt.u32.totalorder %s1012_s8, %s1323_s18 }
  0x54   : > { %p1016_p12 = pneg %p1015_p11  ;;  %p1020_p5 = por %p1019_p4, %p1018_p1 }
  0x56   : > { %p1022_p13 = por %p1021_p9, %p1020_p5 }
  0x58   : > { %p1023_p0 = pnand %p1022_p13, %p1016_p12 }
  0x5a   : > { %1026 = shalt.err (!%p1023_p0)
}
  0x5b   : > { %s1027_s11 = scalar_lea.vmem %s1325_s21, 256  ;;  %s1139_s13 = smov [#allocation9]  }
  0x5c   : > { %p1028_p2 = scmp.ne.s32.totalorder %s1325_s21, %s1027_s11  ;;  %s1032_s17 = sshll.u32 %s1139_s13, 4  ;;  %s1033_s17 = int_to_ptr.vmem [resolvable:$false] %s1032_s17 }
  0x5d   : > { %s1034_s20 = scalar_lea.vmem %s1033_s17, 512  ;;  %p1035_p8 = scmp.lt.s32.totalorder %s1325_s21, %s1033_s17 }
  0x5e   : > { %p1030_p3 = pnand %p1028_p2, %p1014_p10  ;;  %p1036_p11 = scmp.lt.s32.totalorder %s1034_s20, %s1027_s11 }
  0x60   : > { %p1031_p6 = pneg %p1030_p3  ;;  %p1037_p1 = por %p1036_p11, %p1035_p8 }
  0x62   : > { %p1038_p4 = pnand %p1037_p1, %p1031_p6 }
  0x64   : > { %1041 = shalt.err (!%p1038_p4)
}
  0x65   : > { %841 = dma.hbm_to_vmem [thread:$0]  (!%p1329_p7), %s1323_s18, 256, %s1325_s21, %s268_s10  }
  0x66   : > { %p1549_p12 = scmp.ne.s32.totalorder %s1545_s29, 0 }
  0x67   : > { %p1550_p10 = scmp.eq.s32.totalorder (!%p1549_p12), %s1221_s27, 0 }
  0x68   : > { %290 = sbr.rel (%p1549_p12) target bundleno = 358 (0x166), region = 44 }
  0x6f   : > { %1093 = dma.done.wait (%p1550_p10), [#allocation5], 16   ;;  %p1551_p5 = pmov %p1550_p10 }
  0x71   : > { %1095 = vsyncadd (%p1551_p5), [#allocation5], 4294967280  ;;  %p1552_p9 = pmov %p1551_p5 }
  0x72   : > { %p1553_p13 = pmov %p1551_p5 }
  0x73   : > { %1097 = dma.done.wait (%p1552_p9), [#allocation3], 128  }
  0x74   : > { %1099 = vsyncadd (%p1553_p13), [#allocation3], 4294967168  ;;  %p1554_p0 = pmov %p1551_p5 }
  0x76   : > { %1101 = dma.done.wait (%p1554_p0), [#allocation8], 256   ;;  %p1555_p7 = pmov %p1554_p0 }
  0x77   : > { %s304_s29 = sand.u32 1, %s1221_s27   ;;  %s306_s18 = sand.u32 1, %s1118_s22  }
  0x78   : > { %1103 = vsyncadd (%p1555_p7), [#allocation8], 4294967040  ;;  %s1374_s21 = sshll.u32 %s306_s18, 4  ;;  %s305_s30 = scalar_lea.sflag [#allocation3], %s304_s29 }
  0x79   : > { %s308_s10 = scalar_lea.vmem [#allocation9], %s1374_s21  ;;  %p1556_p2 = scmp.ne.s32.totalorder %s1544_s28, 0 }
  0x7b   : > { %1105 = dma.done.wait (%p1556_p2), %s305_s30, 256  }
  0x7c   : > { %1107 = vsyncadd (%p1556_p2), %s305_s30, 4294967040 }
  0x7d   : > { %313 = sfence }
  0x7e   : > { %p802_p3 = scmp.ne.s32.totalorder %s1126_s24, 0 }
  0x7f   : > { %v351_v0 = vld [vmem:[#allocation7] sm:$0xff] (!%p802_p3)  ;;  %v352_v1 = vld [vmem:[#allocation7 + $0x8] sm:$0xff] (!%p802_p3) }
  0x80   : > { %350 = sbr.rel (%p802_p3) target bundleno = 135 (0x87), region = 64  ;;  %353 = vst [vmem:[#allocation10] sm:$0xff] (!%p802_p3), %v351_v0  ;;  %354 = vst [vmem:[#allocation10 + $0x8] sm:$0xff] (!%p802_p3), %v352_v1 }
  0x87 PF: > { %v369_v2 = vld [vmem:[#allocation6] sm:$0xff]  ;;  %v1140_v3 = vmov 2   ;;  %v1141_v4 = vmov 0   ;;  %v1142_v5 = vmov 3   ;;  %v1143_v6 = vmov 1   ;;  %s1383_s28 = smul.u32 5, %s1126_s24 }
  0x88   : > { %921 = vset.pattern.permute.xlu1 %v1140_v3  ;;  %919 = vset.pattern.permute.xlu0 %v1141_v4  ;;  %v1144_v7 = vmov 4   ;;  %v1145_v8 = vmov 5   ;;  %v1146_v9 = vmov 6   ;;  %v1147_v10 = vmov 8   ;;  %v625_v18 = vld [vmem:[%s1536_s2] sm:$0xff]  ;;  %v1401_v27 = vld [vmem:[%s1537_s3 + $0x8] sm:$0xff] }
  0x89   : > { %402 = vperm.xlu1 %921, %v369_v2   ;;  %372 = vperm.xlu0 %919, %v369_v2   ;;  %v1148_v11 = vmov 7   ;;  %v1149_v12 = vmov 11   ;;  %v1150_v13 = vmov 9   ;;  %v1151_v14 = vmov 14   ;;  %s363_s8 = sadd.s32 4, %s1383_s28  ;;  %v1396_v26 = vld [vmem:[%s1537_s3] sm:$0xff] }
  0x8a   : > { %v1152_v15 = vmov 10   ;;  %v1153_v16 = vmov 12   ;;  %s364_s19 = sld [smem:[#allocation2 + %s363_s8]]  ;;  %v1154_v17 = vmov 13   ;;  %v1155_v20 = vmov 15   ;;  %s357_s13 = sadd.s32 1, %s1383_s28 }
  0x8b   : > { %v375_v22 = vlaneseq  ;;  %s356_s17 = sld [smem:[#allocation2 + %s1383_s28]]  ;;  %s359_s29 = sadd.s32 2, %s1383_s28 }
  0x8c   : > { %s358_s20 = sld [smem:[#allocation2 + %s357_s13]]  ;;  %s361_s18 = sadd.s32 3, %s1383_s28 }
  0x8d   : > { %922 = vset.pattern.permute.xlu1 %v1142_v5  ;;  %920 = vset.pattern.permute.xlu0 %v1143_v6  ;;  %v376_v23 = vshrl.u32 %v375_v22, 7  ;;  %s360_s30 = sld [smem:[#allocation2 + %s359_s29]]  ;;  %s1156_s28 = smov [#allocation10]  }
  0x8e   : > { %418 = vperm.xlu1 %922, %v369_v2   ;;  %386 = vperm.xlu0 %920, %v369_v2   ;;  %s362_s8 = sld [smem:[#allocation2 + %s361_s18]]  ;;  %p849_p6 = scmp.eq.s32.totalorder %s1221_s27, 9 }
  0x8f   : > { %v1389_v24 = vsub.s32 0, %v376_v23  ;;  %v1391_v25 = vsub.s32 1, %v376_v23  ;;  %v1403_v28 = vsub.s32 2, %v376_v23  ;;  %v1409_v33 = vsub.s32 3, %v376_v23 }
  0x90   : > { %v626_v19 = vstv %s364_s19  ;;  %v1415_v36 = vsub.s32 4, %v376_v23  ;;  %v1421_v43 = vsub.s32 5, %v376_v23  ;;  %v1435_v56 = vsub.s32 6, %v376_v23  ;;  %s675_s19 = sshll.u32 %s1156_s28, 4  ;;  %s676_s19 = int_to_ptr.vmem [resolvable:$true] %s675_s19 }
  0x91   : > { %v627_v21 = vadd.f32 %v626_v19, %v625_v18  ;;  %v378_v31 = vrot.slane %v1396_v26, %v1389_v24  ;;  %v382_v32 = vrot.slane %v1401_v27, %v1389_v24  ;;  %v392_v34 = vrot.slane %v1396_v26, %v1391_v25  ;;  %s1042_s12 = scalar_lea.vmem %s676_s19, 256  ;;  %p1049_p4 = scmp.lt.s32.totalorder %s676_s19, %s676_s19 }
  0x92   : > { %923 = vset.pattern.permute.xlu1 %v1144_v7  ;;  %924 = vset.pattern.permute.xlu0 %v1145_v8  ;;  %v396_v35 = vrot.slane %v1401_v27, %v1391_v25  ;;  %v408_v37 = vrot.slane %v1396_v26, %v1403_v28  ;;  %v412_v38 = vrot.slane %v1401_v27, %v1403_v28  ;;  %v1437_v3 = vsub.s32 7, %v376_v23  ;;  %p1043_p8 = scmp.ne.s32.totalorder %s676_s19, %s1042_s12  ;;  %p1050_p12 = scmp.lt.s32.totalorder %s1042_s12, %s1042_s12 }
  0x93   : > { %434 = vperm.xlu1 %923, %v369_v2   ;;  %450 = vperm.xlu0 %924, %v369_v2   ;;  %v424_v44 = vrot.slane %v1396_v26, %v1409_v33  ;;  %v428_v45 = vrot.slane %v1401_v27, %v1409_v33  ;;  %v440_v48 = vrot.slane %v1396_v26, %v1415_v36 }
  0x94   : > { %v444_v49 = vrot.slane %v1401_v27, %v1415_v36  ;;  %v456_v54 = vrot.slane %v1396_v26, %v1421_v43  ;;  %v460_v55 = vrot.slane %v1401_v27, %v1421_v43  ;;  %v472_v6 = vrot.slane %v1396_v26, %v1435_v56  ;;  %p1044_p11 = pnand %p1043_p8, %p849_p6  ;;  %p1051_p10 = por %p1050_p12, %p1049_p4 }
  0x95   : > { %v476_v7 = vrot.slane %v1401_v27, %v1435_v56 }
  0x96   : > { %p1045_p1 = pneg %p1044_p11 }
  0x97   : > { %925 = vset.pattern.permute.xlu1 %v1146_v9  ;;  %927 = vset.pattern.permute.xlu0 %v1147_v10 }
  0x98   : > { %466 = vperm.xlu1 %925, %v369_v2   ;;  %498 = vperm.xlu0 %927, %v369_v2   ;;  %p1052_p5 = pnand %p1051_p10, %p1045_p1 }
  0x9c   : > { %926 = vset.pattern.permute.xlu1 %v1148_v11  ;;  %930 = vset.pattern.permute.xlu0 %v1149_v12  ;;  %v488_v11 = vrot.slane %v1396_v26, %v1437_v3  ;;  %v492_v12 = vrot.slane %v1401_v27, %v1437_v3 }
  0x9d   : > { %482 = vperm.xlu1 %926, %v369_v2   ;;  %546 = vperm.xlu0 %930, %v369_v2  }
  0xa1   : > { %928 = vset.pattern.permute.xlu1 %v1150_v13  ;;  %933 = vset.pattern.permute.xlu0 %v1151_v14  ;;  %v1447_v13 = vld [vmem:[#allocation10] sm:$0xff]  ;;  %v1449_v14 = vld [vmem:[#allocation10 + $0x8] sm:$0xff] }
  0xa2   : > { %514 = vperm.xlu1 %928, %v369_v2   ;;  %594 = vperm.xlu0 %933, %v369_v2   ;;  %v504_v19 = vrot.slane %v1447_v13, %v1389_v24 }
  0xa6   : > { %929 = vset.pattern.permute.xlu1 %v1152_v15  ;;  %936 = vset.pattern.permute.xlu0 %v1141_v4 }
  0xa7   : > { %530 = vperm.xlu1 %929, %v369_v2  }
  0xab   : > { %931 = vset.pattern.permute.xlu1 %v1153_v16 }
  0xac   : > { %562 = vperm.xlu1 %931, %v369_v2  }
  0xb0   : > { %932 = vset.pattern.permute.xlu1 %v1154_v17 }
  0xb1   : > { %578 = vperm.xlu1 %932, %v369_v2  }
  0xb5   : > { %934 = vset.pattern.permute.xlu1 %v1155_v20  ;;  %v508_v20 = vrot.slane %v1449_v14, %v1389_v24  ;;  %v536_v24 = vrot.slane %v1447_v13, %v1403_v28 }
  0xb6   : > { %610 = vperm.xlu1 %934, %v369_v2  }
  0xba   : > { %935 = vset.pattern.permute.xlu1 %v1141_v4 }
  0xbb   : > { %630 = vperm.xlu1 %935, %v627_v21  }
 0x108   : > { %v403_v29 = vpop.permute.xlu1 %402  ;;  %v373_v30 = vpop.permute.xlu0 %372 }
 0x109   : > { %v383_v39 = vmul.f32 %v378_v31, %v373_v30  ;;  %v384_v40 = vmul.f32 %v382_v32, %v373_v30  ;;  %v413_v50 = vmul.f32 %v408_v37, %v403_v29  ;;  %v414_v51 = vmul.f32 %v412_v38, %v403_v29 }
 0x10a   : > { %v520_v30 = vrot.slane %v1447_v13, %v1391_v25  ;;  %v524_v31 = vrot.slane %v1449_v14, %v1391_v25  ;;  %v556_v25 = vrot.slane %v1449_v14, %v1409_v33 }
 0x10d   : > { %v419_v41 = vpop.permute.xlu1 %418  ;;  %v387_v42 = vpop.permute.xlu0 %386 }
 0x10e   : > { %v397_v46 = vmul.f32 %v392_v34, %v387_v42  ;;  %v398_v47 = vmul.f32 %v396_v35, %v387_v42  ;;  %v429_v57 = vmul.f32 %v424_v44, %v419_v41  ;;  %v430_v58 = vmul.f32 %v428_v45, %v419_v41 }
 0x10f   : > { %v552_v45 = vrot.slane %v1447_v13, %v1409_v33  ;;  %v584_v33 = vrot.slane %v1447_v13, %v1421_v43 }
 0x110   : > { %v399_v52 = vadd.f32 %v397_v46, %v383_v39  ;;  %v400_v53 = vadd.f32 %v398_v47, %v384_v40  ;;  %v540_v39 = vrot.slane %v1449_v14, %v1403_v28  ;;  %v572_v28 = vrot.slane %v1449_v14, %v1415_v36 }
 0x112   : > { %v415_v59 = vadd.f32 %v413_v50, %v399_v52  ;;  %v416_v60 = vadd.f32 %v414_v51, %v400_v53  ;;  %v435_v61 = vpop.permute.xlu1 %434  ;;  %v451_v62 = vpop.permute.xlu0 %450  ;;  %v568_v52 = vrot.slane %v1447_v13, %v1415_v36 }
 0x113   : > { %v445_v63 = vmul.f32 %v440_v48, %v435_v61  ;;  %v446_v0 = vmul.f32 %v444_v49, %v435_v61  ;;  %v461_v4 = vmul.f32 %v456_v54, %v451_v62  ;;  %v462_v5 = vmul.f32 %v460_v55, %v451_v62 }
 0x114   : > { %v431_v1 = vadd.f32 %v429_v57, %v415_v59  ;;  %v432_v2 = vadd.f32 %v430_v58, %v416_v60  ;;  %v588_v59 = vrot.slane %v1449_v14, %v1421_v43  ;;  %v600_v60 = vrot.slane %v1447_v13, %v1435_v56 }
 0x115   : > { %v604_v61 = vrot.slane %v1449_v14, %v1435_v56  ;;  %v616_v43 = vrot.slane %v1447_v13, %v1437_v3  ;;  %v620_v56 = vrot.slane %v1449_v14, %v1437_v3  ;;  %v637_v3 = vstv %s356_s17 }
 0x116   : > { %v447_v8 = vadd.f32 %v445_v63, %v431_v1  ;;  %v448_v9 = vadd.f32 %v446_v0, %v432_v2 }
 0x117   : > { %v467_v10 = vpop.permute.xlu1 %466  ;;  %v499_v22 = vpop.permute.xlu0 %498 }
 0x118   : > { %v463_v15 = vadd.f32 %v461_v4, %v447_v8  ;;  %v464_v16 = vadd.f32 %v462_v5, %v448_v9  ;;  %v477_v17 = vmul.f32 %v472_v6, %v467_v10  ;;  %v478_v18 = vmul.f32 %v476_v7, %v467_v10 }
 0x119   : > { %v509_v35 = vmul.f32 %v504_v19, %v499_v22  ;;  %v510_v37 = vmul.f32 %v508_v20, %v499_v22 }
 0x11a   : > { %v479_v23 = vadd.f32 %v477_v17, %v463_v15  ;;  %v480_v26 = vadd.f32 %v478_v18, %v464_v16 }
 0x11c   : > { %v483_v21 = vpop.permute.xlu1 %482  ;;  %v547_v47 = vpop.permute.xlu0 %546 }
 0x11d   : > { %v493_v29 = vmul.f32 %v488_v11, %v483_v21  ;;  %v494_v27 = vmul.f32 %v492_v12, %v483_v21  ;;  %v557_v55 = vmul.f32 %v552_v45, %v547_v47  ;;  %v558_v57 = vmul.f32 %v556_v25, %v547_v47  ;;  %v660_v47 = vld [vmem:[%s308_s10 + $0x8] sm:$0xff] }
 0x11f   : > { %v495_v32 = vadd.f32 %v493_v29, %v479_v23  ;;  %v496_v34 = vadd.f32 %v494_v27, %v480_v26  ;;  %v640_v26 = vstv %s358_s20  ;;  %v638_v29 = vmul.f32 %v637_v3, %v1447_v13 }
 0x121   : > { %v515_v38 = vpop.permute.xlu1 %514  ;;  %v511_v40 = vadd.f32 %v509_v35, %v495_v32  ;;  %v512_v41 = vadd.f32 %v510_v37, %v496_v34  ;;  %v595_v1 = vpop.permute.xlu0 %594 }
 0x122   : > { %v525_v42 = vmul.f32 %v520_v30, %v515_v38  ;;  %v526_v44 = vmul.f32 %v524_v31, %v515_v38  ;;  %v605_v4 = vmul.f32 %v600_v60, %v595_v1  ;;  %v606_v5 = vmul.f32 %v604_v61, %v595_v1 }
 0x123   : > { %v639_v30 = vmul.f32 %v637_v3, %v1449_v14  ;;  %v659_v14 = vld [vmem:[%s308_s10] sm:$0xff] }
 0x124   : > { %v527_v48 = vadd.f32 %v525_v42, %v511_v40  ;;  %v528_v49 = vadd.f32 %v526_v44, %v512_v41  ;;  %v654_v40 = vstv %s362_s8 }
 0x126   : > { %v531_v46 = vpop.permute.xlu1 %530 }
 0x127   : > { %v541_v50 = vmul.f32 %v536_v24, %v531_v46  ;;  %v542_v51 = vmul.f32 %v540_v39, %v531_v46  ;;  %v649_v39 = vstv %s360_s30 }
 0x129   : > { %v543_v53 = vadd.f32 %v541_v50, %v527_v48  ;;  %v544_v54 = vadd.f32 %v542_v51, %v528_v49 }
 0x12b   : > { %v563_v58 = vpop.permute.xlu1 %562  ;;  %v559_v62 = vadd.f32 %v557_v55, %v543_v53  ;;  %v560_v63 = vadd.f32 %v558_v57, %v544_v54 }
 0x12c   : > { %v573_v36 = vmul.f32 %v568_v52, %v563_v58  ;;  %v574_v0 = vmul.f32 %v572_v28, %v563_v58 }
 0x12e   : > { %v575_v6 = vadd.f32 %v573_v36, %v559_v62  ;;  %v576_v7 = vadd.f32 %v574_v0, %v560_v63 }
 0x130   : > { %v579_v2 = vpop.permute.xlu1 %578 }
 0x131   : > { %v589_v8 = vmul.f32 %v584_v33, %v579_v2  ;;  %v590_v9 = vmul.f32 %v588_v59, %v579_v2 }
 0x133   : > { %v591_v10 = vadd.f32 %v589_v8, %v575_v6  ;;  %v592_v11 = vadd.f32 %v590_v9, %v576_v7 }
 0x135   : > { %v607_v12 = vadd.f32 %v605_v4, %v591_v10  ;;  %v608_v15 = vadd.f32 %v606_v5, %v592_v11  ;;  %v611_v16 = vpop.permute.xlu1 %610 }
 0x136   : > { %v621_v17 = vmul.f32 %v616_v43, %v611_v16  ;;  %v622_v18 = vmul.f32 %v620_v56, %v611_v16 }
 0x138   : > { %v623_v19 = vadd.f32 %v621_v17, %v607_v12  ;;  %v624_v20 = vadd.f32 %v622_v18, %v608_v15 }
 0x13a   : > { %v631_v21 = vpop.permute.xlu1 %630 }
 0x13b   : > { %v633_v22 = vadd.f32 %v631_v21, %v623_v19  ;;  %v634_v23 = vadd.f32 %v631_v21, %v624_v20 }
 0x13d   : > { %937 = vtanh.f32 %v633_v22 }
 0x13e   : > { %939 = vtanh.f32 %v634_v23 }
 0x147   : > { %v938_v27 = vpop.eup %937 }
 0x148   : > { %v940_v31 = vpop.eup %939  ;;  %v641_v32 = vmul.f32 %v938_v27, %v640_v26 }
 0x149   : > { %v642_v34 = vmul.f32 %v940_v31, %v640_v26 }
 0x14a   : > { %v643_v35 = vsub.f32 %v638_v29, %v641_v32 }
 0x14b   : > { %v644_v37 = vsub.f32 %v639_v30, %v642_v34 }
 0x14c   : > { %v803_v38 = vclamps-f32 %v643_v35, 1.0 }
 0x14d   : > { %v804_v24 = vclamps-f32 %v644_v37, 1.0 }
 0x14e   : > { %v652_v41 = vsub.f32 %v638_v29, %v803_v38  ;;  %v650_v44 = vmul.f32 %v803_v38, %v649_v39 }
 0x14f   : > { %v653_v42 = vsub.f32 %v639_v30, %v804_v24  ;;  %v651_v13 = vmul.f32 %v804_v24, %v649_v39 }
 0x150   : > { %v655_v45 = vmul.f32 %v654_v40, %v652_v41 }
 0x151   : > { %v656_v25 = vmul.f32 %v654_v40, %v653_v42 }
 0x152   : > { %v657_v46 = vadd.f32 %v655_v45, %v650_v44 }
 0x153   : > { %v658_v48 = vadd.f32 %v656_v25, %v651_v13 }
 0x154   : > { %v661_v49 = vadd.f32 %v659_v14, %v657_v46 }
 0x155   : > { %v662_v50 = vadd.f32 %v660_v47, %v658_v48 }
 0x156   : > { %663 = vst [vmem:[#allocation10] sm:$0xff] %v661_v49 }
 0x157   : > { %664 = vst [vmem:[#allocation10 + $0x8] sm:$0xff] %v662_v50 }
 0x158   : > { %1055 = shalt.err (!%p1052_p5)
}
 0x159   : > { %s1056_s14 = scalar_lea.hbm %s1540_s6, 256 }
 0x15a   : > { %p1057_p9 = scmp.ne.s32.totalorder %s1540_s6, %s1056_s14  ;;  %p1062_p7 = scmp.lt.u32.totalorder %s1056_s14, %s1540_s6 }
 0x15c   : > { %p1058_p13 = pnand %p1057_p9, %p849_p6 }
 0x15e   : > { %p1059_p0 = pneg %p1058_p13 }
 0x160   : > { %p1064_p2 = pnand %p1062_p7, %p1059_p0 }
 0x162   : > { %1067 = shalt.err (!%p1064_p2)
}
 0x163   : > { %825 = dma.vmem_to_hbm [thread:$0]  (%p849_p6), %s676_s19, 256, %s1540_s6, [#allocation4]  }
 0x164   : > { %1109 = dma.done.wait (%p849_p6), [#allocation4], 256  }
 0x165   : > { %1111 = vsyncadd (%p849_p6), [#allocation4], 4294967040 }
 0x166 PF: > { %s20_s26 = sadd.s32 1, %s1134_s26   ;;  %s1557_s21 = smov %s1118_s22 }
 0x167   : > { %p17_p3 = scmp.ge.s32.totalorder %s20_s26, 12   ;;  %s1558_s22 = smov %s1122_s23 }
 0x168   : > { %s1559_s23 = smov %s1318_s16  ;;  %s1560_s24 = smov %s1130_s25 }
 0x169   : > { %s1561_s25 = smov %s1563_s9  ;;  %19 = sbr.rel (!%p17_p3) target bundleno = 6 (0x6), region = 102 }
 0x170   :  { %688 = vsyncpa [#allocation3], 1 }
 0x171   :  { %690 = vsyncpa [#allocation3 + $0x1], 1 }
 0x172   :  { %691 = vsyncpa [#allocation8], 1 }
 0x173   :  { %692 = vsyncpa [#allocation4], 1 }
 0x174   :  { %694 = vsyncpa [#allocation4 + $0x1], 1 }
 0x175   :  { %695 = vsyncpa [#allocation5], 1 }
 0x176   :  { %697 = vsyncpa [#allocation5 + $0x1], 1 }

</bundles_post_ra>
